<compile_context>
chip_gen: v6e
topology: v6e:2x2x1
jax: 0.10.0
libtpu: 0.0.40
codegen_flags: <defaults>
</compile_context>

<pallas_src>
import jax
import jax.numpy as jnp
from jax.experimental import pallas as pl
from jax.experimental.pallas import tpu as pltpu


def _l2_loss_kernel(y_pred_ref, labels_ref, out_ref):
    # Elementwise hot path: squared difference on the VPU (dtype-preserving,
    # matching torch.pow(y_pred - labels, 2)).
    diff = y_pred_ref[...] - labels_ref[...]
    out_ref[...] = diff * diff


# ---- tiling policy constants -------------------------------------------------
_LANE_CANDIDATES = (1024, 512, 256, 128)   # lane-dense widths (multiples of 128)
_DEFAULT_VMEM_CAP = 64 * 1024 * 1024       # conservative fallback (v7x per-TC VMEM)
_SMALL_BYTES = 1 * 1024 * 1024             # per-array bytes: single-block fast path
_MIN_SPLIT_BYTES = 4 * 1024 * 1024         # above this, force >= 2 grid steps (2 TCs on v7x)


def _vmem_capacity_bytes() -> int:
    """Physical VMEM bytes for the current TPU generation (safe fallback)."""
    try:
        cap = int(pltpu.get_tpu_info().vmem_capacity_bytes)
        if cap > 0:
            return cap
    except Exception:
        pass
    return _DEFAULT_VMEM_CAP


def _sublane_multiple(dtype) -> int:
    """Row-tile granularity: 8 for f32, 16 for bf16/fp16, 32 for int8/fp8.

    Sub-32-bit dtypes pack along sublanes; keeping row tiles a multiple of the
    packed sublane count keeps stores fully unmasked.
    """
    itemsize = jnp.dtype(dtype).itemsize
    return 8 * max(1, 4 // max(1, itemsize))


def _pick_tile_rows(rows: int, bytes_per_row: int, sub: int,
                    budget: int, total_bytes: int) -> int:
    """Largest row tile under the double-buffered VMEM footprint budget.

    3 arrays * 2 pipeline buffers * tile_rows * bytes_per_row <= budget.
    If the whole array fits in one tile but is large, split into ~2 tiles so
    both v7x TensorCores get work on the "parallel" grid axis.
    """
    max_rows = budget // (6 * bytes_per_row)
    max_rows = max(sub, (max_rows // sub) * sub)
    if rows > max_rows:
        return max_rows
    if total_bytes >= _MIN_SPLIT_BYTES:
        half = ((pl.cdiv(rows, 2) + sub - 1) // sub) * sub  # multiple of sub -> 8-divisible
        if 0 < half < rows:
            return half
    return rows  # full extent: bypasses the (8,128) divisibility requirement


def _call_elementwise(y_pred, labels, block_shape, grid, index_map, vmem_limit):
    total = y_pred.size
    itemsize = jnp.dtype(y_pred.dtype).itemsize
    spec = pl.BlockSpec(block_shape, index_map)
    return pl.pallas_call(
        _l2_loss_kernel,
        out_shape=jax.ShapeDtypeStruct(y_pred.shape, y_pred.dtype),
        grid_spec=pltpu.PrefetchScalarGridSpec(
            num_scalar_prefetch=0,
            grid=grid,
            in_specs=[spec, spec],
            out_specs=spec,
        ),
        compiler_params=pltpu.CompilerParams(
            dimension_semantics=("parallel",),
            vmem_limit_bytes=vmem_limit,
        ),
        cost_estimate=pl.CostEstimate(
            flops=2 * total,                       # sub + mul per element
            transcendentals=0,
            bytes_accessed=3 * total * itemsize,   # 2 reads + 1 write
        ),
    )(y_pred, labels)


def l2_loss(y_pred: jax.Array, labels: jax.Array) -> jax.Array:
    """Pallas implementation of L2Loss.forward: (y_pred - labels)**2.

    y_pred, labels: shape (batch, n_label), same dtype.
    Returns an array of the same shape/dtype.
    """
    assert y_pred.shape == labels.shape, "y_pred and labels must match in shape"
    assert y_pred.dtype == labels.dtype, "y_pred and labels must match in dtype"
    batch, n_label = y_pred.shape
    total = batch * n_label
    itemsize = jnp.dtype(y_pred.dtype).itemsize
    total_bytes = total * itemsize
    sub = _sublane_multiple(y_pred.dtype)

    vmem_cap = _vmem_capacity_bytes()
    footprint_budget = (3 * vmem_cap) // 8   # 48 MiB on 128 MiB parts, 24 MiB on v7x
    vmem_limit = (3 * vmem_cap) // 4         # 96 MiB on 128 MiB parts, 48 MiB on v7x

    # ---- small-problem path: one full-array block, no reshaping ------------
    if total_bytes <= _SMALL_BYTES:
        return _call_elementwise(
            y_pred, labels,
            block_shape=(batch, n_label),
            grid=(1,),
            index_map=lambda i: (0, 0),
            vmem_limit=vmem_limit,
        )

    # ---- lane-dense path: free row-major reshape, no padding ---------------
    lanes = next((c for c in _LANE_CANDIDATES if total % c == 0), None)
    if lanes is not None:
        rows = total // lanes
        yp2 = y_pred.reshape(rows, lanes)
        lb2 = labels.reshape(rows, lanes)
        tile_rows = _pick_tile_rows(rows, lanes * itemsize, sub,
                                    footprint_budget, total_bytes)
        out2 = _call_elementwise(
            yp2, lb2,
            block_shape=(tile_rows, lanes),
            grid=(pl.cdiv(rows, tile_rows),),
            index_map=lambda i: (i, 0),
            vmem_limit=vmem_limit,
        )
        return out2.reshape(batch, n_label)

    # ---- direct 2D tiling: full-extent last dim, ragged row-tiles masked ---
    row_bytes = n_label * itemsize
    if 6 * sub * row_bytes <= footprint_budget:
        tile_rows = _pick_tile_rows(batch, row_bytes, sub,
                                    footprint_budget, total_bytes)
        return _call_elementwise(
            y_pred, labels,
            block_shape=(tile_rows, n_label),
            grid=(pl.cdiv(batch, tile_rows),),
            index_map=lambda i: (i, 0),
            vmem_limit=vmem_limit,
        )

    # ---- last resort: pad to lane-dense (single enormous indivisible rows) --
    lanes = 1024
    rows = pl.cdiv(total, lanes)
    pad = rows * lanes - total
    yp = jnp.pad(y_pred.reshape(-1), (0, pad)).reshape(rows, lanes)
    lb = jnp.pad(labels.reshape(-1), (0, pad)).reshape(rows, lanes)
    tile_rows = _pick_tile_rows(rows, lanes * itemsize, sub,
                                footprint_budget, total_bytes)
    out = _call_elementwise(
        yp, lb,
        block_shape=(tile_rows, lanes),
        grid=(pl.cdiv(rows, tile_rows),),
        index_map=lambda i: (i, 0),
        vmem_limit=vmem_limit,
    )
    return out.reshape(-1)[:total].reshape(batch, n_label)


if __name__ == "__main__":
    key = jax.random.PRNGKey(0)
    k1, k2, k3, k4, k5, k6 = jax.random.split(key, 6)

    # Case 1: small shape consistent with the module: (batch, n_label).
    batch, n_label = 2, 32
    y_pred = jax.random.normal(k1, (batch, n_label), dtype=jnp.float32)
    labels = jax.random.normal(k2, (batch, n_label), dtype=jnp.float32)

    out = l2_loss(y_pred, labels)
    jax.block_until_ready(out)

    ref = (y_pred - labels) ** 2
    assert out.shape == ref.shape and out.dtype == ref.dtype
    assert jnp.allclose(out, ref, atol=1e-6, rtol=1e-6)

    # Case 2: exercise the direct 2D-tiling path (total not divisible by 128,
    # n_label kept as full-extent last dim; no pad, no slice). ~1.2 MB each.
    b2, n2 = 1000, 300
    y2 = jax.random.normal(k3, (b2, n2), dtype=jnp.float32)
    lab2 = jax.random.normal(k4, (b2, n2), dtype=jnp.float32)

    out2 = l2_loss(y2, lab2)
    jax.block_until_ready(out2)

    ref2 = (y2 - lab2) ** 2
    assert out2.shape == ref2.shape and out2.dtype == ref2.dtype
    assert jnp.allclose(out2, ref2, atol=1e-6, rtol=1e-6)

    # Case 3: exercise the lane-dense reshape path (total divisible by 1024),
    # still modest size (~2 MB per array).
    b3, n3 = 256, 2048
    y3 = jax.random.normal(k5, (b3, n3), dtype=jnp.float32)
    lab3 = jax.random.normal(k6, (b3, n3), dtype=jnp.float32)

    out3 = l2_loss(y3, lab3)
    jax.block_until_ready(out3)

    ref3 = (y3 - lab3) ** 2
    assert out3.shape == ref3.shape and out3.dtype == ref3.dtype
    assert jnp.allclose(out3, ref3, atol=1e-6, rtol=1e-6)

    print("KERNEL_OK")
</pallas_src>

<mosaic_0001>
module attributes {stable_mosaic.version = 11 : i64} {
  func.func @_l2_loss_kernel(%arg0: i32, %arg1: memref<2x32xf32, #tpu.memory_space<vmem>>, %arg2: memref<2x32xf32, #tpu.memory_space<vmem>>, %arg3: memref<2x32xf32, #tpu.memory_space<vmem>>) attributes {dimension_semantics = [#tpu.dimension_semantics<parallel>], iteration_bounds = array<i64: 1>, scalar_prefetch = 0 : i64, scratch_operands = 0 : i64, tpu.core_type = #tpu.core_type<tc>, window_params = [{pipeline_mode = #tpu.pipeline_mode<synchronous>, transform_indices = @transform_0, window_bounds = array<i64: 2, 32>}, {pipeline_mode = #tpu.pipeline_mode<synchronous>, transform_indices = @transform_1, window_bounds = array<i64: 2, 32>}, {pipeline_mode = #tpu.pipeline_mode<synchronous>, transform_indices = @transform_2, window_bounds = array<i64: 2, 32>}]} {
    %c0 = arith.constant 0 : index
    %c0_0 = arith.constant 0 : index
    %0 = vector.load %arg1[%c0, %c0_0] : memref<2x32xf32, #tpu.memory_space<vmem>>, vector<2x32xf32>
    %c0_1 = arith.constant 0 : index
    %c0_2 = arith.constant 0 : index
    %1 = vector.load %arg2[%c0_1, %c0_2] : memref<2x32xf32, #tpu.memory_space<vmem>>, vector<2x32xf32>
    %2 = arith.subf %0, %1 : vector<2x32xf32>
    %3 = arith.mulf %2, %2 : vector<2x32xf32>
    %c0_3 = arith.constant 0 : index
    %c0_4 = arith.constant 0 : index
    %4 = vector.load %arg3[%c0_3, %c0_4] : memref<2x32xf32, #tpu.memory_space<vmem>>, vector<2x32xf32>
    tpu.vector_store %arg3[%c0_3, %c0_4], %3 {strides = array<i32>} : memref<2x32xf32, #tpu.memory_space<vmem>>, vector<2x32xf32>,
    return
  }
  func.func @transform_0(%arg0: i32) -> (i32, i32) {
    %c0_i32 = arith.constant 0 : i32
    %c0_i32_0 = arith.constant 0 : i32
    %c0_i32_1 = arith.constant 0 : i32
    return %c0_i32, %c0_i32_0 : i32, i32
  }
  func.func @transform_1(%arg0: i32) -> (i32, i32) {
    %c0_i32 = arith.constant 0 : i32
    %c0_i32_0 = arith.constant 0 : i32
    %c0_i32_1 = arith.constant 0 : i32
    return %c0_i32, %c0_i32_0 : i32, i32
  }
  func.func @transform_2(%arg0: i32) -> (i32, i32) {
    %c0_i32 = arith.constant 0 : i32
    %c0_i32_0 = arith.constant 0 : i32
    %c0_i32_1 = arith.constant 0 : i32
    return %c0_i32, %c0_i32_0 : i32, i32
  }
}

</mosaic_0001>

<bundles_post_ra>
// kernel: tpu_custom_call.1
= control target key start
LH: loop header
LB: loop body
LE: loop exit
PB: predicated region body
PF: predicated region fallthrough
CT: control target
= control target key end

     0   :  { %7 = vsyncpa [#allocation3], 0  ;;  %s154_s0 = inlined_call_operand.hbm [shape: f32[2,32], index: 0, kind: input, shape index: {}]   ;;  %s155_s1 = inlined_call_operand.hbm [shape: f32[2,32], index: 1, kind: input, shape index: {}]   ;;  %s156_s2 = inlined_call_operand.hbm [shape: f32[2,32], index: 2, kind: output, shape index: {}]  }
   0x1   :  { %8 = vsyncpa [#allocation6], 0 }
   0x2   :  { %9 = vsyncpa [#allocation4], 0  ;;  %s127_s9 = smov [#allocation2]   ;;  %s128_s11 = smov [#allocation5]  }
   0x3   :  { %s16_s10 = sshll.u32 %s127_s9, 4  ;;  %s26_s12 = sshll.u32 %s128_s11, 4  ;;  %s17_s10 = int_to_ptr.vmem [resolvable:$true] %s16_s10  ;;  %s27_s12 = int_to_ptr.vmem [resolvable:$true] %s26_s12 }
   0x4   :  { %s69_s13 = scalar_lea.vmem %s17_s10, 32  ;;  %p74_p1 = scmp.lt.s32.totalorder %s17_s10, %s17_s10 }
   0x5   :  { %p70_p0 = scmp.ne.s32.totalorder %s17_s10, %s69_s13  ;;  %p75_p2 = scmp.lt.s32.totalorder %s69_s13, %s69_s13 }
   0x7   :  { %p76_p3 = por %p75_p2, %p74_p1 }
   0x9   :  { %p77_p4 = pnand %p76_p3, %p70_p0 }
   0xb   :  { %80 = shalt.err (!%p77_p4)
}
   0xc   :  { %19 = dma.hbm_to_vmem [thread:$0]  %s154_s0, 32, %s17_s10, [#allocation3]  }
   0xd   :  { %s89_s16 = scalar_lea.vmem %s27_s12, 32  ;;  %p94_p6 = scmp.lt.s32.totalorder %s27_s12, %s27_s12 }
   0xe   :  { %p90_p5 = scmp.ne.s32.totalorder %s27_s12, %s89_s16  ;;  %p95_p7 = scmp.lt.s32.totalorder %s89_s16, %s89_s16 }
  0x10   :  { %p96_p8 = por %p95_p7, %p94_p6 }
  0x12   :  { %p97_p9 = pnand %p96_p8, %p90_p5 }
  0x14   :  { %100 = shalt.err (!%p97_p9)
}
  0x15   :  { %29 = dma.hbm_to_vmem [thread:$0]  %s155_s1, 32, %s27_s12, [#allocation6]  }
  0x16   :  { %121 = dma.done.wait [#allocation3], 32  }
  0x17   :  { %122 = vsyncadd [#allocation3], 4294967264 }
  0x18   :  { %123 = dma.done.wait [#allocation6], 32  }
  0x19   :  { %124 = vsyncadd [#allocation6], 4294967264  ;;  %v36_v0 = vld [vmem:[#allocation2] sm:$0x3]  ;;  %v37_v1 = vld [vmem:[#allocation5] sm:$0x3] }
  0x1a   :  { %s129_s19 = smov [#allocation7]   ;;  %v38_v2 = vsub.f32 %v36_v0, %v37_v1  ;;  %vm40_vm0 = vcmask 254976  }
  0x1b   :  { %s48_s20 = sshll.u32 %s129_s19, 4  ;;  %s49_s20 = int_to_ptr.vmem [resolvable:$true] %s48_s20 }
  0x1c   :  { %v39_v3 = vmul.f32 %v38_v2, %v38_v2  ;;  %s101_s0 = scalar_lea.vmem %s49_s20, 32  ;;  %p106_p11 = scmp.lt.s32.totalorder %s49_s20, %s49_s20 }
  0x1d   :  { %p102_p10 = scmp.ne.s32.totalorder %s49_s20, %s101_s0  ;;  %p107_p12 = scmp.lt.s32.totalorder %s101_s0, %s101_s0 }
  0x1e   :  { %41 = vst.msk [vmem:[#allocation7] sm:$0x3] %vm40_vm0, %v39_v3 }
  0x1f   :  { %p108_p13 = por %p107_p12, %p106_p11 }
  0x21   :  { %p109_p0 = pnand %p108_p13, %p102_p10 }
  0x23   :  { %112 = shalt.err (!%p109_p0)
}
  0x24   :  { %51 = dma.vmem_to_hbm [thread:$0]  %s49_s20, 32, %s156_s2, [#allocation4]  }
  0x25   :  { %125 = dma.done.wait [#allocation4], 32  }
  0x26   :  { %126 = vsyncadd [#allocation4], 4294967264 }
  0x27   :  { %55 = vsyncpa [#allocation3], 1 }
  0x28   :  { %56 = vsyncpa [#allocation6], 1 }
  0x29   :  { %57 = vsyncpa [#allocation4], 1 }

</bundles_post_ra>
